<compile_context>
chip_gen: v7x
topology: tpu7x:2x2x1
jax: 0.10.0
libtpu: 0.0.40
codegen_flags: <defaults>
</compile_context>

<pallas_src>
import functools

import jax
import jax.numpy as jnp
from jax import lax
from jax.experimental import pallas as pl
from jax.experimental.pallas import tpu as pltpu

# ---------------- model config (matches the CustomMLP instance above) -------
SIZE_INPUT = 32
HIDDEN = (64, 32)
SIZE_OUTPUT = 8
BATCH = 16

MAX_TILE_B = 2048       # cap on batch-tile rows for the large-batch path
SPLIT_THRESHOLD = 512   # below this: one resident grid step (latency floor)


def _round_up(n, m):
    return ((n + m - 1) // m) * m


def _choose_tile(batch):
    """Return (tile_b, n_tiles). Large batches get >=2 lane-aligned tiles."""
    if batch < SPLIT_THRESHOLD:
        return batch, 1
    n_tiles = max(2, pl.cdiv(batch, MAX_TILE_B))
    tile_b = _round_up(pl.cdiv(batch, n_tiles), 128)
    return tile_b, n_tiles


# ---------------- Pallas kernel: full MLP hot path ---------------------------
def _make_kernel(matmul_dtype):
    def mlp_kernel(x_ref, w1_ref, b1_ref, w2_ref, b2_ref, w3t_ref, b3t_ref, o_ref):
        x = x_ref[...].astype(matmul_dtype)

        # Linear(32 -> 64) + ReLU  (f32 accumulate, f32 elementwise)
        h1 = jnp.dot(x, w1_ref[...], preferred_element_type=jnp.float32) + b1_ref[...]
        h1 = jnp.maximum(h1, 0.0).astype(matmul_dtype)

        # Linear(64 -> 32) + Tanh
        h2 = jnp.dot(h1, w2_ref[...], preferred_element_type=jnp.float32) + b2_ref[...]
        h2 = jnp.tanh(h2).astype(matmul_dtype)

        # Linear(32 -> 8), computed transposed: logits_T = W3^T @ h2^T -> [8, tile_b]
        # (A @ B^T form; output is lane-dense over the batch axis, no padding.)
        logits_t = lax.dot_general(
            w3t_ref[...], h2, (((1,), (1,)), ((), ())),
            preferred_element_type=jnp.float32) + b3t_ref[...]

        # Softmax over the output axis (nn.Softmax(dim=1)) -> cheap 8-row
        # sublane reduction on the transposed slab.
        m = jnp.max(logits_t, axis=0, keepdims=True)
        e = jnp.exp(logits_t - m)
        denom = jnp.sum(e, axis=0, keepdims=True)
        r = pl.reciprocal(denom, approx=True)   # EUP vrcp ...
        r = r * (2.0 - denom * r)                # ... + one Newton step -> ~f32 exact
        o_ref[...] = (e * r).astype(o_ref.dtype)

    return mlp_kernel


def custom_mlp_forward(x, params, *, use_bf16_matmul=False):
    """x: [B, SIZE_INPUT] float32 -> [B, SIZE_OUTPUT] float32 (softmax probs)."""
    w1, b1, w2, b2, w3, b3 = params
    B = x.shape[0]

    # Last layer stored transposed: w3t [8, 32], b3t [8, 1] (broadcast over lanes).
    w3t = jnp.transpose(w3)
    b3t = b3.reshape(SIZE_OUTPUT, 1)

    matmul_dtype = jnp.bfloat16 if use_bf16_matmul else jnp.float32
    if use_bf16_matmul:
        # Weights cast once wrapper-side; activations cast at the dot inputs.
        w1 = w1.astype(matmul_dtype)
        w2 = w2.astype(matmul_dtype)
        w3t = w3t.astype(matmul_dtype)

    tile_b, n_tiles = _choose_tile(B)
    b_pad = tile_b * n_tiles
    x_in = x if b_pad == B else jnp.pad(x, ((0, b_pad - B), (0, 0)))

    # Weights/biases: full arrays, resident across all grid steps.
    full = lambda arr: pl.BlockSpec(arr.shape, lambda i: (0, 0))

    out_t = pl.pallas_call(
        _make_kernel(matmul_dtype),
        out_shape=jax.ShapeDtypeStruct((SIZE_OUTPUT, b_pad), jnp.float32),
        grid_spec=pltpu.PrefetchScalarGridSpec(
            num_scalar_prefetch=0,
            grid=(n_tiles,),
            in_specs=[
                pl.BlockSpec((tile_b, SIZE_INPUT), lambda i: (i, 0)),  # x tile
                full(w1),
                full(b1),
                full(w2),
                full(b2),
                full(w3t),
                full(b3t),
            ],
            out_specs=pl.BlockSpec((SIZE_OUTPUT, tile_b), lambda i: (0, i)),
        ),
        compiler_params=pltpu.CompilerParams(dimension_semantics=("parallel",)),
    )(x_in, w1, b1, w2, b2, w3t, b3t)

    # [8, b_pad] -> [B, 8]: drop batch padding, transpose the narrow real output.
    return jnp.transpose(out_t[:, :B])


# ---------------- deterministic parameter init (PyTorch-style uniform) ------
def init_params(key):
    def linear(key, fan_in, fan_out):
        kw, kb = jax.random.split(key)
        bound = 1.0 / jnp.sqrt(fan_in)
        # stored as [in, out] (transposed vs. torch's [out, in])
        w = jax.random.uniform(kw, (fan_in, fan_out), jnp.float32, -bound, bound)
        b = jax.random.uniform(kb, (1, fan_out), jnp.float32, -bound, bound)
        return w, b

    k1, k2, k3 = jax.random.split(key, 3)
    w1, b1 = linear(k1, SIZE_INPUT, HIDDEN[0])
    w2, b2 = linear(k2, HIDDEN[0], HIDDEN[1])
    w3, b3 = linear(k3, HIDDEN[1], SIZE_OUTPUT)
    return w1, b1, w2, b2, w3, b3


def reference_forward(x, params):
    w1, b1, w2, b2, w3, b3 = params
    h1 = jnp.maximum(x @ w1 + b1, 0.0)
    h2 = jnp.tanh(h1 @ w2 + b2)
    logits = h2 @ w3 + b3
    return jax.nn.softmax(logits, axis=1)


if __name__ == "__main__":
    key = jax.random.PRNGKey(0)
    kx, kp = jax.random.split(key)
    params = init_params(kp)

    # --- small-batch (single resident grid step) path ---
    x = jax.random.normal(kx, (BATCH, SIZE_INPUT), jnp.float32)
    out = jax.block_until_ready(custom_mlp_forward(x, params))
    ref = reference_forward(x, params)
    assert out.shape == (BATCH, SIZE_OUTPUT)
    assert jnp.allclose(out, ref, atol=1e-5, rtol=1e-5), "mismatch vs reference (small batch)"
    assert jnp.allclose(jnp.sum(out, axis=1), 1.0, atol=1e-5), "softmax rows must sum to 1"

    # --- multi-tile path (>=2 grid steps, cdiv + padding) ---
    B2 = 640  # -> 2 tiles of 384 rows, batch padded to 768
    x2 = jax.random.normal(jax.random.fold_in(kx, 1), (B2, SIZE_INPUT), jnp.float32)
    out2 = jax.block_until_ready(custom_mlp_forward(x2, params))
    ref2 = reference_forward(x2, params)
    assert out2.shape == (B2, SIZE_OUTPUT)
    assert jnp.allclose(out2, ref2, atol=1e-5, rtol=1e-5), "mismatch vs reference (large batch)"

    print("KERNEL_OK")
</pallas_src>

<mosaic_0001>
module attributes {stable_mosaic.version = 11 : i64} {
  func.func @mlp_kernel(%arg0: i32, %arg1: memref<16x32xf32, #tpu.memory_space<vmem>>, %arg2: memref<32x64xf32, #tpu.memory_space<vmem>>, %arg3: memref<1x64xf32, #tpu.memory_space<vmem>>, %arg4: memref<64x32xf32, #tpu.memory_space<vmem>>, %arg5: memref<1x32xf32, #tpu.memory_space<vmem>>, %arg6: memref<8x32xf32, #tpu.memory_space<vmem>>, %arg7: memref<8x1xf32, #tpu.memory_space<vmem>>, %arg8: memref<8x16xf32, #tpu.memory_space<vmem>>) attributes {dimension_semantics = [#tpu.dimension_semantics<parallel>], iteration_bounds = array<i64: 1>, scalar_prefetch = 0 : i64, scratch_operands = 0 : i64, tpu.core_type = #tpu.core_type<tc>, window_params = [{transform_indices = @transform_0, window_bounds = array<i64: 16, 32>}, {pipeline_mode = #tpu.pipeline_mode<synchronous>, transform_indices = @transform_1, window_bounds = array<i64: 32, 64>}, {pipeline_mode = #tpu.pipeline_mode<synchronous>, transform_indices = @transform_2, window_bounds = array<i64: 1, 64>}, {pipeline_mode = #tpu.pipeline_mode<synchronous>, transform_indices = @transform_3, window_bounds = array<i64: 64, 32>}, {pipeline_mode = #tpu.pipeline_mode<synchronous>, transform_indices = @transform_4, window_bounds = array<i64: 1, 32>}, {pipeline_mode = #tpu.pipeline_mode<synchronous>, transform_indices = @transform_5, window_bounds = array<i64: 8, 32>}, {pipeline_mode = #tpu.pipeline_mode<synchronous>, transform_indices = @transform_6, window_bounds = array<i64: 8, 1>}, {transform_indices = @transform_7, window_bounds = array<i64: 8, 16>}]} {
    %c0 = arith.constant 0 : index
    %c0_0 = arith.constant 0 : index
    %0 = vector.load %arg1[%c0, %c0_0] : memref<16x32xf32, #tpu.memory_space<vmem>>, vector<16x32xf32>
    %c0_1 = arith.constant 0 : index
    %c0_2 = arith.constant 0 : index
    %1 = vector.load %arg2[%c0_1, %c0_2] : memref<32x64xf32, #tpu.memory_space<vmem>>, vector<32x64xf32>
    %cst = arith.constant dense<0.000000e+00> : vector<16x64xf32>
    %2 = tpu.matmul %0, %1, %cst {dimension_numbers = #tpu.dot_dimension_numbers<[1], [0], [0], [1], [0, 0, 1, 1], [], []>} : vector<16x32xf32>, vector<32x64xf32>, vector<16x64xf32> -> vector<16x64xf32>
    %c0_3 = arith.constant 0 : index
    %c0_4 = arith.constant 0 : index
    %3 = vector.load %arg3[%c0_3, %c0_4] : memref<1x64xf32, #tpu.memory_space<vmem>>, vector<1x64xf32>
    %4 = vector.broadcast %3 : vector<1x64xf32> to vector<16x64xf32>
    %5 = arith.addf %2, %4 : vector<16x64xf32>
    %cst_5 = arith.constant 0.000000e+00 : f32
    %6 = vector.broadcast %cst_5 : f32 to vector<16x64xf32>
    %7 = arith.maximumf %5, %6 : vector<16x64xf32>
    %c0_6 = arith.constant 0 : index
    %c0_7 = arith.constant 0 : index
    %8 = vector.load %arg4[%c0_6, %c0_7] : memref<64x32xf32, #tpu.memory_space<vmem>>, vector<64x32xf32>
    %cst_8 = arith.constant dense<0.000000e+00> : vector<16x32xf32>
    %9 = tpu.matmul %7, %8, %cst_8 {dimension_numbers = #tpu.dot_dimension_numbers<[1], [0], [0], [1], [0, 0, 1, 1], [], []>} : vector<16x64xf32>, vector<64x32xf32>, vector<16x32xf32> -> vector<16x32xf32>
    %c0_9 = arith.constant 0 : index
    %c0_10 = arith.constant 0 : index
    %10 = vector.load %arg5[%c0_9, %c0_10] : memref<1x32xf32, #tpu.memory_space<vmem>>, vector<1x32xf32>
    %11 = vector.broadcast %10 : vector<1x32xf32> to vector<16x32xf32>
    %12 = arith.addf %9, %11 : vector<16x32xf32>
    %13 = math.tanh %12 : vector<16x32xf32>
    %c0_11 = arith.constant 0 : index
    %c0_12 = arith.constant 0 : index
    %14 = vector.load %arg6[%c0_11, %c0_12] : memref<8x32xf32, #tpu.memory_space<vmem>>, vector<8x32xf32>
    %cst_13 = arith.constant dense<0.000000e+00> : vector<8x16xf32>
    %15 = tpu.matmul %14, %13, %cst_13 {dimension_numbers = #tpu.dot_dimension_numbers<[1], [1], [0], [0], [0, 0, 1, 0], [], []>} : vector<8x32xf32>, vector<16x32xf32>, vector<8x16xf32> -> vector<8x16xf32>
    %c0_14 = arith.constant 0 : index
    %c0_15 = arith.constant 0 : index
    %16 = vector.load %arg7[%c0_14, %c0_15] : memref<8x1xf32, #tpu.memory_space<vmem>>, vector<8x1xf32>
    %17 = vector.broadcast %16 : vector<8x1xf32> to vector<8x16xf32>
    %18 = arith.addf %15, %17 : vector<8x16xf32>
    %cst_16 = arith.constant dense<0xFF800000> : vector<16xf32>
    %19 = vector.multi_reduction <maximumf>, %18, %cst_16 [0] : vector<8x16xf32> to vector<16xf32>
    %20 = vector.shape_cast %19 : vector<16xf32> to vector<1x16xf32>
    %21 = vector.broadcast %20 : vector<1x16xf32> to vector<8x16xf32>
    %22 = arith.subf %18, %21 : vector<8x16xf32>
    %23 = math.exp %22 : vector<8x16xf32>
    %cst_17 = arith.constant dense<0.000000e+00> : vector<16xf32>
    %24 = vector.multi_reduction <add>, %23, %cst_17 [0] : vector<8x16xf32> to vector<16xf32>
    %25 = vector.shape_cast %24 : vector<16xf32> to vector<1x16xf32>
    %26 = tpu.reciprocal %25 {approx = true} : vector<1x16xf32> -> vector<1x16xf32>
    %27 = arith.mulf %25, %26 : vector<1x16xf32>
    %cst_18 = arith.constant 2.000000e+00 : f32
    %28 = vector.broadcast %cst_18 : f32 to vector<1x16xf32>
    %29 = arith.subf %28, %27 : vector<1x16xf32>
    %30 = arith.mulf %26, %29 : vector<1x16xf32>
    %31 = vector.broadcast %30 : vector<1x16xf32> to vector<8x16xf32>
    %32 = arith.mulf %23, %31 : vector<8x16xf32>
    %c0_19 = arith.constant 0 : index
    %c0_20 = arith.constant 0 : index
    %33 = vector.load %arg8[%c0_19, %c0_20] : memref<8x16xf32, #tpu.memory_space<vmem>>, vector<8x16xf32>
    tpu.vector_store %arg8[%c0_19, %c0_20], %32 {strides = array<i32>} : memref<8x16xf32, #tpu.memory_space<vmem>>, vector<8x16xf32>,
    return
  }
  func.func @transform_0(%arg0: i32) -> (i32, i32) {
    %c0_i32 = arith.constant 0 : i32
    %c0_i32_0 = arith.constant 0 : i32
    return %arg0, %c0_i32 : i32, i32
  }
  func.func @transform_1(%arg0: i32) -> (i32, i32) {
    %c0_i32 = arith.constant 0 : i32
    %c0_i32_0 = arith.constant 0 : i32
    %c0_i32_1 = arith.constant 0 : i32
    return %c0_i32, %c0_i32_0 : i32, i32
  }
  func.func @transform_2(%arg0: i32) -> (i32, i32) {
    %c0_i32 = arith.constant 0 : i32
    %c0_i32_0 = arith.constant 0 : i32
    %c0_i32_1 = arith.constant 0 : i32
    return %c0_i32, %c0_i32_0 : i32, i32
  }
  func.func @transform_3(%arg0: i32) -> (i32, i32) {
    %c0_i32 = arith.constant 0 : i32
    %c0_i32_0 = arith.constant 0 : i32
    %c0_i32_1 = arith.constant 0 : i32
    return %c0_i32, %c0_i32_0 : i32, i32
  }
  func.func @transform_4(%arg0: i32) -> (i32, i32) {
    %c0_i32 = arith.constant 0 : i32
    %c0_i32_0 = arith.constant 0 : i32
    %c0_i32_1 = arith.constant 0 : i32
    return %c0_i32, %c0_i32_0 : i32, i32
  }
  func.func @transform_5(%arg0: i32) -> (i32, i32) {
    %c0_i32 = arith.constant 0 : i32
    %c0_i32_0 = arith.constant 0 : i32
    %c0_i32_1 = arith.constant 0 : i32
    return %c0_i32, %c0_i32_0 : i32, i32
  }
  func.func @transform_6(%arg0: i32) -> (i32, i32) {
    %c0_i32 = arith.constant 0 : i32
    %c0_i32_0 = arith.constant 0 : i32
    %c0_i32_1 = arith.constant 0 : i32
    return %c0_i32, %c0_i32_0 : i32, i32
  }
  func.func @transform_7(%arg0: i32) -> (i32, i32) {
    %c0_i32 = arith.constant 0 : i32
    %c0_i32_0 = arith.constant 0 : i32
    return %c0_i32, %arg0 : i32, i32
  }
}

</mosaic_0001>

<bundles_post_ra>
// kernel: tpu_custom_call.1
= control target key start
LH: loop header
LB: loop body
LE: loop exit
PB: predicated region body
PF: predicated region fallthrough
CT: control target
= control target key end

     0   :  { %vm40_vm0 = vcmask 261120   ;;  %s597_s0 = inlined_call_operand.vmem [shape: f32[16,32], index: 0, kind: input, shape index: {}]   ;;  %s598_s1 = inlined_call_operand.vmem [shape: f32[32,64], index: 1, kind: input, shape index: {}]   ;;  %s599_s2 = inlined_call_operand.vmem [shape: f32[1,64], index: 2, kind: input, shape index: {}]   ;;  %s600_s3 = inlined_call_operand.vmem [shape: f32[64,32], index: 3, kind: input, shape index: {}]   ;;  %s601_s4 = inlined_call_operand.vmem [shape: f32[1,32], index: 4, kind: input, shape index: {}]   ;;  %s602_s5 = inlined_call_operand.vmem [shape: f32[8,32], index: 5, kind: input, shape index: {}]   ;;  %s603_s6 = inlined_call_operand.vmem [shape: f32[8,1], index: 6, kind: input, shape index: {}]   ;;  %s604_s7 = inlined_call_operand.hbm [shape: f32[8,16], index: 7, kind: output, shape index: {}]  }
   0x1   :  { %v29_v0 = vld [vmem:[%s598_s1] sm:$0xff]  ;;  %v30_v1 = vld [vmem:[%s598_s1 + $0x8] sm:$0xff]  ;;  %v31_v2 = vld [vmem:[%s598_s1 + $0x10] sm:$0xff] }
   0x2   :  { %v412_v3 = vpack.c.bf16 %v30_v1, %v29_v0  ;;  %v32_v4 = vld [vmem:[%s598_s1 + $0x18] sm:$0xff]  ;;  %v27_v5 = vld [vmem:[%s597_s0] sm:$0xff]  ;;  %v125_v8 = vld [vmem:[%s600_s3 + $0x8] sm:$0xff] }
   0x3   :  { %v416_v6 = vpack.c.bf16 %v32_v4, %v31_v2  ;;  %383 = vmatprep.mubr.msk.f32.mxu0 %vm40_vm0, %v27_v5  ;;  %v124_v7 = vld [vmem:[%s600_s3] sm:$0xff]  ;;  %v126_v9 = vld [vmem:[%s600_s3 + $0x10] sm:$0xff]  ;;  %v127_v11 = vld [vmem:[%s600_s3 + $0x18] sm:$0xff] }
   0x4   :  { %413 = vmatprep.subr.bf16.mxu0 %v412_v3  ;;  %v420_v10 = vpack.c.bf16 %v125_v8, %v124_v7  ;;  %v424_v12 = vpack.c.bf16 %v127_v11, %v126_v9  ;;  %v128_v13 = vld [vmem:[%s600_s3 + $0x20] sm:$0xff]  ;;  %v129_v14 = vld [vmem:[%s600_s3 + $0x28] sm:$0xff] }
   0x5   :  { %415 = vmatpush3.bf16.msra.mxu0 %v412_v3 }
   0x6   :  { %12 = vsyncpa [#allocation3], 0  ;;  %417 = vmatprep.subr.bf16.mxu0 %v416_v6  ;;  %421 = vmatprep.subr.bf16.mxu1 %v420_v10  ;;  %v428_v15 = vpack.c.bf16 %v129_v14, %v128_v13  ;;  %v28_v16 = vld [vmem:[%s597_s0 + $0x8] sm:$0xff]  ;;  %v130_v17 = vld [vmem:[%s600_s3 + $0x30] sm:$0xff]  ;;  %vm139_vm1 = vcmask 523264   ;;  %v478_v27 = vmov 0.0|0.0  }
   0x7   :  { %423 = vmatpush3.bf16.msra.mxu1 %v420_v10  ;;  %v131_v18 = vld [vmem:[%s600_s3 + $0x38] sm:$0xff]  ;;  %v347_v20 = vld [vmem:[%s599_s2] ss:$0 sm:$0xff]  ;;  %vm479_vm2 = vmmov 0   ;;  %v480_v28 = vmov 0.0   ;;  %v481_v30 = vmov 0   ;;  %vm438_vm3 = vmpackc.low %vm40_vm0, %vm40_vm0 }
   0x8   :  { %425 = vmatprep.subr.bf16.mxu1 %v424_v12  ;;  %v432_v19 = vpack.c.bf16 %v131_v18, %v130_v17  ;;  %v224_v29 = vld [vmem:[%s603_s6] sm:$0xff]  ;;  %445 = vset.pattern.permute.xlu0 %v481_v30  ;;  %vm309_vm4 = vcmask 130048  }
   0x9   :  { %419 = vmatpush3.bf16.msra.mxu0 %v416_v6  ;;  %227 = vperm.xlu0 %445, %v224_v29   ;;  %v350_v31 = vld [vmem:[%s601_s4] ss:$0 sm:$0xff]  ;;  %s482_s4 = smov [#allocation2]  }
   0xa   :  { %436 = vmatprep.subr.bf16.mxu0 %v478_v27  ;;  %v223_v39 = vld [vmem:[%s602_s5] sm:$0xff]  ;;  %s339_s5 = sshll.u32 %s482_s4, 4  ;;  %s340_s5 = int_to_ptr.vmem [resolvable:$true] %s339_s5 }
   0xb   :  { %427 = vmatpush3.bf16.msra.mxu1 %v424_v12  ;;  %s454_s9 = scalar_lea.vmem %s340_s5, 128  ;;  %p459_p1 = scmp.lt.s32.totalorder %s340_s5, %s340_s5 }
   0xc   :  { %384 = vmatmul.mubr.msk.f32.vlgmr.msra.gmra.mrb[0].mxu0 %vm40_vm0, %v28_v16  ;;  %429 = vmatprep.subr.bf16.mxu1 %v428_v15  ;;  %p455_p0 = scmp.ne.s32.totalorder %s340_s5, %s454_s9  ;;  %p460_p2 = scmp.lt.s32.totalorder %s454_s9, %s454_s9 }
   0xd   :  { %409 = vmatprep.mubr.msk.f32.mxu0 %vm479_vm2, %v480_v28 }
   0xe   :  { %p461_p3 = por %p460_p2, %p459_p1 }
   0xf   :  { %431 = vmatpush3.bf16.msra.mxu1 %v428_v15 }
  0x10   :  { %433 = vmatprep.subr.bf16.mxu1 %v432_v19  ;;  %p462_p4 = pnand %p461_p3, %p455_p0 }
  0x13   :  { %435 = vmatpush3.bf16.msra.mxu1 %v432_v19 }
  0x88   :  { %v228_v40 = vpop.permute.xlu0 %227 }
  0xdf   :  { %v385_v21 = vpop.f32.mrb[0].mxu0 }
  0xe0   :  { %v119_v22 = vadd.f32 %v385_v21, %v347_v20  ;;  %v113_v23 = vpop.f32.mrb[1].mxu0 }
  0xe1   :  { %v114_v24 = vadd.f32 %v347_v20, %v113_v23 }
  0xe2   :  { %v123_v26 = vmax.f32 %v119_v22, 0.0 }
  0xe3   :  { %v122_v25 = vmax.f32 %v114_v24, 0.0 }
  0xe5   :  { %402 = vmatprep.mubr.msk.f32.mxu1 %vm139_vm1, %v122_v25 }
  0xe6   :  { %403 = vmatmul.mubr.msk.f32.vlgmr.msra.gmra.mrb[0].mxu1 %vm139_vm1, %v123_v26 }
 0x1b9   :  { %v404_v32 = vpop.f32.mrb[0].mxu1 }
 0x1ba   :  { %v218_v33 = vadd.f32 %v404_v32, %v350_v31  ;;  %v212_v34 = vpop.f32.mrb[1].mxu1 }
 0x1bb   :  { %v213_v35 = vadd.f32 %v350_v31, %v212_v34 }
 0x1bc   :  { %446 = vtanh.f32 %v218_v33 }
 0x1bd   :  { %448 = vtanh.f32 %v213_v35 }
 0x1c6   :  { %v447_v36 = vpop.eup %446 }
 0x1c7   :  { %v449_v37 = vpop.eup %448 }
 0x1c8   :  { %v437_v38 = vpack.c.bf16 %v447_v36, %v449_v37 }
 0x1ca   :  { %439 = vmatpush3.bf16.xpose.msk.msra.mxu0 %vm438_vm3, %v437_v38 }
 0x1d1   :  { %410 = vmatmul.mubr.msk.f32.vlgmr.msra.gmra.mrb[2].mxu0 %vm40_vm0, %v223_v39 }
 0x2a4   :  { %v305_v41 = vpop.f32.mrb[2].mxu0 }
 0x2a5   :  { %v306_v42 = vadd.f32 %v305_v41, %v228_v40  ;;  %v411_v43 = vpop.f32.mrb[3].mxu0 }
 0x2a7   :  { %v310_v44 = vsel %vm309_vm4, %v306_v42, -inf }
 0x2a8   :  { %v311_v45 = vrot.slane %v310_v44, 4 }
 0x2aa   :  { %v312_v46 = vmax.f32 %v310_v44, %v311_v45 }
 0x2ac   :  { %v313_v47 = vrot.slane %v312_v46, 2 }
 0x2ae   :  { %v314_v48 = vmax.f32 %v312_v46, %v313_v47 }
 0x2b0   :  { %v315_v49 = vrot.slane %v314_v48, 1 }
 0x2b2   :  { %v316_v50 = vmax.f32 %v314_v48, %v315_v49 }
 0x2b4   :  { %v317_v51 = vsub.f32 %v306_v42, %v316_v50 }
 0x2b6   :  { %v318_v52 = vmul.f32 1.442695, %v317_v51 }
 0x2b8   :  { %450 = vpow2.f32 %v318_v52 }
 0x2c2   :  { %v451_v53 = vpop.eup %450 }
 0x2c3   :  { %v320_v54 = vsel %vm309_vm4, %v451_v53, 0.0 }
 0x2c4   :  { %v321_v55 = vrot.slane %v320_v54, 4 }
 0x2c6   :  { %v322_v56 = vadd.f32 %v321_v55, %v320_v54 }
 0x2c8   :  { %v323_v57 = vrot.slane %v322_v56, 2 }
 0x2ca   :  { %v324_v58 = vadd.f32 %v323_v57, %v322_v56 }
 0x2cc   :  { %v325_v59 = vrot.slane %v324_v58, 1 }
 0x2ce   :  { %v326_v60 = vadd.f32 %v325_v59, %v324_v58 }
 0x2d0   :  { %452 = vrcp.f32 %v326_v60 }
 0x2da   :  { %v453_v61 = vpop.eup %452 }
 0x2db   :  { %v328_v62 = vmul.f32 %v453_v61, %v326_v60 }
 0x2dd   :  { %v329_v63 = vsub.f32 2.0, %v328_v62 }
 0x2df   :  { %v330_v0 = vmul.f32 %v453_v61, %v329_v63 }
 0x2e1   :  { %v331_v1 = vmul.f32 %v451_v53, %v330_v0 }
 0x2e3   :  { %332 = vst.msk [vmem:[#allocation2] sm:$0xff] %vm309_vm4, %v331_v1 }
 0x2e4   :  { %465 = shalt.err (!%p462_p4)
}
 0x2e5   :  { %s466_s12 = scalar_lea.hbm %s604_s7, 128 }
 0x2e6   :  { %p467_p5 = scmp.ne.s32.totalorder %s604_s7, %s466_s12  ;;  %p470_p6 = scmp.lt.u32.totalorder %s466_s12, %s604_s7 }
 0x2e8   :  { %p472_p7 = pnand %p470_p6, %p467_p5 }
 0x2ea   :  { %475 = shalt.err (!%p472_p7)
}
 0x2eb   :  { %342 = dma.vmem_to_hbm [thread:$0]  %s340_s5, 128, %s604_s7, [#allocation3]  }
 0x2ec   :  { %476 = dma.done.wait [#allocation3], 128  }
 0x2ed   :  { %477 = vsyncadd [#allocation3], 4294967168 }
 0x2ee   :  { %346 = vsyncpa [#allocation3], 1 }

</bundles_post_ra>
